<compile_context>
chip_gen: v5e
topology: v5e:2x2
jax: 0.10.0
libtpu: 0.0.40
codegen_flags: <defaults>
</compile_context>

<pallas_src>
import jax
import jax.numpy as jnp
from jax.experimental import pallas as pl
from jax.experimental.pallas import tpu as pltpu


def _round_up(a, b):
    return (a + b - 1) // b * b


def _sage_kernel(adj_ref, xc_ref, xs_ref, invd_ref, wst_ref, b1_ref,
                 wfc_ref, bfc_ref, out_ref, xin_ref):
    # grid = (row tiles, K tiles); K (adjacency contraction) is the reduction axis.
    k = pl.program_id(1)
    f = xs_ref.shape[1]                      # padded feature width (lane multiple)

    @pl.when(k == 0)
    def _():
        xin_ref[...] = jnp.zeros_like(xin_ref)   # [x_self | agg] slab, agg half accumulates

    # Accumulate A @ x over K tiles. Adjacency is bf16 0/1 -> exact after upcast.
    xin_ref[:, f:] += jnp.dot(adj_ref[...].astype(jnp.float32), xc_ref[...],
                              preferred_element_type=jnp.float32)

    @pl.when(k == pl.num_programs(1) - 1)
    def _():
        # mean normalization with precomputed 1/deg (per-graph constant, exact f32)
        xin_ref[:, f:] *= invd_ref[...]          # (TM, F) * (TM, 1)
        xin_ref[:, :f] = xs_ref[...]             # self path into first half of the slab

        # fused SAGEConv: single K=2F matmul against stacked [W_self; W_neigh]
        hid = jnp.maximum(
            jnp.dot(xin_ref[...], wst_ref[...], preferred_element_type=jnp.float32)
            + b1_ref[...], 0.0)

        # final Linear(nhid, nclass); output is lane-dense (C padded to 128)
        out_ref[...] = (jnp.dot(hid, wfc_ref[...], preferred_element_type=jnp.float32)
                        + bfc_ref[...])


def sage_forward(adj, x, w_self, w_neigh, b1, w_fc, b_fc, *, tm=256, tk=2048):
    n, f = x.shape
    nhid = w_self.shape[1]
    nclass = w_fc.shape[1]

    # pad feature / hidden / class dims to full lane width (zero-padding is exact)
    F = _round_up(f, 128)
    H = _round_up(nhid, 128)
    C = _round_up(nclass, 128)

    # tile sizes (clamped for small graphs; K tile must be a lane multiple or full)
    tm = min(tm, _round_up(n, 8))
    tk = min(tk, _round_up(n, 128))
    nr = _round_up(n, tm)        # padded node-row dim
    nk = _round_up(n, tk)        # padded contraction dim

    # per-graph constant: exact 1/deg computed once outside the kernel
    deg = jnp.maximum(jnp.sum(adj.astype(jnp.float32), axis=-1, keepdims=True), 1.0)
    inv_deg = jnp.pad(1.0 / deg, ((0, nr - n), (0, 0)), constant_values=1.0)

    # adjacency: bf16 storage (0/1 is exact), zero-padded
    adj_p = jnp.pad(adj.astype(jnp.bfloat16), ((0, nr - n), (0, nk - n)))

    # node features: one copy laid out for the contraction (K) axis, one for the self path
    x_f32 = x.astype(jnp.float32)
    x_cols = jnp.pad(x_f32, ((0, nk - n), (0, F - f)))
    x_rows = jnp.pad(x_f32, ((0, nr - n), (0, F - f)))

    # stacked weight for the fused self+neighbor matmul, all padded to lane width
    ws_p = jnp.pad(w_self.astype(jnp.float32), ((0, F - f), (0, H - nhid)))
    wn_p = jnp.pad(w_neigh.astype(jnp.float32), ((0, F - f), (0, H - nhid)))
    w_stack = jnp.concatenate([ws_p, wn_p], axis=0)                    # (2F, H)
    b1_p = jnp.pad(b1.astype(jnp.float32), ((0, 0), (0, H - nhid)))
    wfc_p = jnp.pad(w_fc.astype(jnp.float32), ((0, H - nhid), (0, C - nclass)))
    bfc_p = jnp.pad(b_fc.astype(jnp.float32), ((0, 0), (0, C - nclass)))

    grid = (nr // tm, nk // tk)
    out = pl.pallas_call(
        _sage_kernel,
        out_shape=jax.ShapeDtypeStruct((nr, C), jnp.float32),
        grid_spec=pltpu.PrefetchScalarGridSpec(
            num_scalar_prefetch=0,
            grid=grid,
            in_specs=[
                pl.BlockSpec((tm, tk), lambda i, k: (i, k)),      # adjacency tile (streamed)
                pl.BlockSpec((tk, F), lambda i, k: (k, 0)),       # x, contraction operand
                pl.BlockSpec((tm, F), lambda i, k: (i, 0)),       # x, self path
                pl.BlockSpec((tm, 1), lambda i, k: (i, 0)),       # 1/deg
                pl.BlockSpec((2 * F, H), lambda i, k: (0, 0)),    # [W_self; W_neigh] (resident)
                pl.BlockSpec((1, H), lambda i, k: (0, 0)),        # b1 (resident)
                pl.BlockSpec((H, C), lambda i, k: (0, 0)),        # W_fc (resident)
                pl.BlockSpec((1, C), lambda i, k: (0, 0)),        # b_fc (resident)
            ],
            out_specs=pl.BlockSpec((tm, C), lambda i, k: (i, 0)),
            scratch_shapes=[pltpu.VMEM((tm, 2 * F), jnp.float32)],   # [x_self | agg] slab
        ),
        compiler_params=pltpu.CompilerParams(
            dimension_semantics=("parallel", "arbitrary"),
            vmem_limit_bytes=48 * 1024 * 1024,   # safe on v7x (64 MiB) and v5e/v6e (128 MiB)
        ),
    )(adj_p, x_cols, x_rows, inv_deg, w_stack, b1_p, wfc_p, bfc_p)

    return out[:n, :nclass]


def sage_reference(adj, x, w_self, w_neigh, b1, w_fc, b_fc):
    deg = jnp.maximum(jnp.sum(adj, axis=-1, keepdims=True), 1.0)
    agg = (adj @ x) / deg
    h = jnp.maximum(x @ w_self + agg @ w_neigh + b1, 0.0)
    return h @ w_fc + b_fc


if __name__ == "__main__":
    def make_inputs(key, n, nfeat, nhid, nclass):
        k_adj, k_x, k_ws, k_wn, k_b1, k_wfc, k_bfc = jax.random.split(key, 7)
        adj = (jax.random.uniform(k_adj, (n, n)) < 0.2).astype(jnp.float32)
        adj = adj * (1.0 - jnp.eye(n, dtype=jnp.float32))          # dense 0/1, no self loops
        x = jax.random.normal(k_x, (n, nfeat), dtype=jnp.float32)
        w_self = jax.random.normal(k_ws, (nfeat, nhid), dtype=jnp.float32) * 0.1
        w_neigh = jax.random.normal(k_wn, (nfeat, nhid), dtype=jnp.float32) * 0.1
        b1 = jax.random.normal(k_b1, (1, nhid), dtype=jnp.float32) * 0.01
        w_fc = jax.random.normal(k_wfc, (nhid, nclass), dtype=jnp.float32) * 0.1
        b_fc = jax.random.normal(k_bfc, (1, nclass), dtype=jnp.float32) * 0.01
        return adj, x, w_self, w_neigh, b1, w_fc, b_fc

    key = jax.random.PRNGKey(0)
    k1, k2 = jax.random.split(key)

    # Case 1: tiny graph (N=32, nfeat=16, nhid=32, nclass=8) -> single (1,1) grid block.
    args = make_inputs(k1, 32, 16, 32, 8)
    out = jax.block_until_ready(sage_forward(*args))
    ref = sage_reference(*args)
    assert out.shape == (32, 8)
    assert jnp.allclose(out, ref, atol=1e-4, rtol=1e-4)

    # Case 2: larger graph exercising the row/K tiled grid + accumulator (3x3 grid).
    args = make_inputs(k2, 640, 16, 32, 8)
    out = jax.block_until_ready(sage_forward(*args, tm=256, tk=256))
    ref = sage_reference(*args)
    assert out.shape == (640, 8)
    assert jnp.allclose(out, ref, atol=1e-4, rtol=1e-4)

    # TODO(synk): dropout from the module __init__ is unused in forward (eval-mode no-op), so not implemented.
    print("KERNEL_OK")
</pallas_src>

<mosaic_0001>
module attributes {stable_mosaic.version = 11 : i64} {
  func.func @_sage_kernel(%arg0: i32, %arg1: i32, %arg2: memref<32x128xbf16, #tpu.memory_space<vmem>>, %arg3: memref<128x128xf32, #tpu.memory_space<vmem>>, %arg4: memref<32x128xf32, #tpu.memory_space<vmem>>, %arg5: memref<32x1xf32, #tpu.memory_space<vmem>>, %arg6: memref<256x128xf32, #tpu.memory_space<vmem>>, %arg7: memref<1x128xf32, #tpu.memory_space<vmem>>, %arg8: memref<128x128xf32, #tpu.memory_space<vmem>>, %arg9: memref<1x128xf32, #tpu.memory_space<vmem>>, %arg10: memref<32x128xf32, #tpu.memory_space<vmem>>, %arg11: memref<32x256xf32, #tpu.memory_space<vmem>>) attributes {dimension_semantics = [#tpu.dimension_semantics<parallel>, #tpu.dimension_semantics<arbitrary>], iteration_bounds = array<i64: 1, 1>, scalar_prefetch = 0 : i64, scratch_operands = 1 : i64, tpu.core_type = #tpu.core_type<tc>, window_params = [{transform_indices = @transform_0, window_bounds = array<i64: 32, 128>}, {transform_indices = @transform_1, window_bounds = array<i64: 128, 128>}, {transform_indices = @transform_2, window_bounds = array<i64: 32, 128>}, {transform_indices = @transform_3, window_bounds = array<i64: 32, 1>}, {pipeline_mode = #tpu.pipeline_mode<synchronous>, transform_indices = @transform_4, window_bounds = array<i64: 256, 128>}, {pipeline_mode = #tpu.pipeline_mode<synchronous>, transform_indices = @transform_5, window_bounds = array<i64: 1, 128>}, {pipeline_mode = #tpu.pipeline_mode<synchronous>, transform_indices = @transform_6, window_bounds = array<i64: 128, 128>}, {pipeline_mode = #tpu.pipeline_mode<synchronous>, transform_indices = @transform_7, window_bounds = array<i64: 1, 128>}, {transform_indices = @transform_8, window_bounds = array<i64: 32, 128>}]} {
    %c0_i32 = arith.constant 0 : i32
    %0 = arith.cmpi eq, %arg1, %c0_i32 : i32
    %1 = arith.extui %0 : i1 to i32
    %c0_i32_0 = arith.constant 0 : i32
    %2 = arith.cmpi ne, %1, %c0_i32_0 : i32
    scf.if %2 {
      %cst_9 = arith.constant 0.000000e+00 : f32
      %13 = vector.broadcast %cst_9 : f32 to vector<32x256xf32>
      %c0_10 = arith.constant 0 : index
      %c0_11 = arith.constant 0 : index
      %14 = vector.load %arg11[%c0_10, %c0_11] : memref<32x256xf32, #tpu.memory_space<vmem>>, vector<32x256xf32>
      tpu.vector_store %arg11[%c0_10, %c0_11], %13 {strides = array<i32>} : memref<32x256xf32, #tpu.memory_space<vmem>>, vector<32x256xf32>,
    } else {
    }
    %c0 = arith.constant 0 : index
    %c128 = arith.constant 128 : index
    %3 = vector.load %arg11[%c0, %c128] : memref<32x256xf32, #tpu.memory_space<vmem>>, vector<32x128xf32>
    %c0_1 = arith.constant 0 : index
    %c0_2 = arith.constant 0 : index
    %4 = vector.load %arg2[%c0_1, %c0_2] : memref<32x128xbf16, #tpu.memory_space<vmem>>, vector<32x128xbf16>
    %5 = arith.extf %4 : vector<32x128xbf16> to vector<32x128xf32>
    %c0_3 = arith.constant 0 : index
    %c0_4 = arith.constant 0 : index
    %6 = vector.load %arg3[%c0_3, %c0_4] : memref<128x128xf32, #tpu.memory_space<vmem>>, vector<128x128xf32>
    %cst = arith.constant dense<0.000000e+00> : vector<32x128xf32>
    %7 = tpu.matmul %5, %6, %cst {dimension_numbers = #tpu.dot_dimension_numbers<[1], [0], [0], [1], [0, 0, 1, 1], [], []>} : vector<32x128xf32>, vector<128x128xf32>, vector<32x128xf32> -> vector<32x128xf32>
    %8 = arith.addf %3, %7 : vector<32x128xf32>
    %c0_5 = arith.constant 0 : index
    %c128_6 = arith.constant 128 : index
    %9 = vector.load %arg11[%c0_5, %c128_6] : memref<32x256xf32, #tpu.memory_space<vmem>>, vector<32x128xf32>
    tpu.vector_store %arg11[%c0_5, %c128_6], %8 {strides = array<i32>} : memref<32x256xf32, #tpu.memory_space<vmem>>, vector<32x128xf32>,
    %c0_i32_7 = arith.constant 0 : i32
    %10 = arith.cmpi eq, %arg1, %c0_i32_7 : i32
    %11 = arith.extui %10 : i1 to i32
    %c0_i32_8 = arith.constant 0 : i32
    %12 = arith.cmpi ne, %11, %c0_i32_8 : i32
    scf.if %12 {
      %c0_9 = arith.constant 0 : index
      %c128_10 = arith.constant 128 : index
      %13 = vector.load %arg11[%c0_9, %c128_10] : memref<32x256xf32, #tpu.memory_space<vmem>>, vector<32x128xf32>
      %c0_11 = arith.constant 0 : index
      %c0_12 = arith.constant 0 : index
      %14 = vector.load %arg5[%c0_11, %c0_12] : memref<32x1xf32, #tpu.memory_space<vmem>>, vector<32x1xf32>
      %15 = vector.broadcast %14 : vector<32x1xf32> to vector<32x128xf32>
      %16 = arith.mulf %13, %15 : vector<32x128xf32>
      %c0_13 = arith.constant 0 : index
      %c128_14 = arith.constant 128 : index
      %17 = vector.load %arg11[%c0_13, %c128_14] : memref<32x256xf32, #tpu.memory_space<vmem>>, vector<32x128xf32>
      tpu.vector_store %arg11[%c0_13, %c128_14], %16 {strides = array<i32>} : memref<32x256xf32, #tpu.memory_space<vmem>>, vector<32x128xf32>,
      %c0_15 = arith.constant 0 : index
      %c0_16 = arith.constant 0 : index
      %18 = vector.load %arg4[%c0_15, %c0_16] : memref<32x128xf32, #tpu.memory_space<vmem>>, vector<32x128xf32>
      %c0_17 = arith.constant 0 : index
      %c0_18 = arith.constant 0 : index
      %19 = vector.load %arg11[%c0_17, %c0_18] : memref<32x256xf32, #tpu.memory_space<vmem>>, vector<32x128xf32>
      tpu.vector_store %arg11[%c0_17, %c0_18], %18 {strides = array<i32>} : memref<32x256xf32, #tpu.memory_space<vmem>>, vector<32x128xf32>,
      %c0_19 = arith.constant 0 : index
      %c0_20 = arith.constant 0 : index
      %20 = vector.load %arg11[%c0_19, %c0_20] : memref<32x256xf32, #tpu.memory_space<vmem>>, vector<32x256xf32>
      %c0_21 = arith.constant 0 : index
      %c0_22 = arith.constant 0 : index
      %21 = vector.load %arg6[%c0_21, %c0_22] : memref<256x128xf32, #tpu.memory_space<vmem>>, vector<256x128xf32>
      %cst_23 = arith.constant dense<0.000000e+00> : vector<32x128xf32>
      %22 = tpu.matmul %20, %21, %cst_23 {dimension_numbers = #tpu.dot_dimension_numbers<[1], [0], [0], [1], [0, 0, 1, 1], [], []>} : vector<32x256xf32>, vector<256x128xf32>, vector<32x128xf32> -> vector<32x128xf32>
      %c0_24 = arith.constant 0 : index
      %c0_25 = arith.constant 0 : index
      %23 = vector.load %arg7[%c0_24, %c0_25] : memref<1x128xf32, #tpu.memory_space<vmem>>, vector<1x128xf32>
      %24 = vector.broadcast %23 : vector<1x128xf32> to vector<32x128xf32>
      %25 = arith.addf %22, %24 : vector<32x128xf32>
      %cst_26 = arith.constant 0.000000e+00 : f32
      %26 = vector.broadcast %cst_26 : f32 to vector<32x128xf32>
      %27 = arith.maximumf %25, %26 : vector<32x128xf32>
      %c0_27 = arith.constant 0 : index
      %c0_28 = arith.constant 0 : index
      %28 = vector.load %arg8[%c0_27, %c0_28] : memref<128x128xf32, #tpu.memory_space<vmem>>, vector<128x128xf32>
      %cst_29 = arith.constant dense<0.000000e+00> : vector<32x128xf32>
      %29 = tpu.matmul %27, %28, %cst_29 {dimension_numbers = #tpu.dot_dimension_numbers<[1], [0], [0], [1], [0, 0, 1, 1], [], []>} : vector<32x128xf32>, vector<128x128xf32>, vector<32x128xf32> -> vector<32x128xf32>
      %c0_30 = arith.constant 0 : index
      %c0_31 = arith.constant 0 : index
      %30 = vector.load %arg9[%c0_30, %c0_31] : memref<1x128xf32, #tpu.memory_space<vmem>>, vector<1x128xf32>
      %31 = vector.broadcast %30 : vector<1x128xf32> to vector<32x128xf32>
      %32 = arith.addf %29, %31 : vector<32x128xf32>
      %c0_32 = arith.constant 0 : index
      %c0_33 = arith.constant 0 : index
      %33 = vector.load %arg10[%c0_32, %c0_33] : memref<32x128xf32, #tpu.memory_space<vmem>>, vector<32x128xf32>
      tpu.vector_store %arg10[%c0_32, %c0_33], %32 {strides = array<i32>} : memref<32x128xf32, #tpu.memory_space<vmem>>, vector<32x128xf32>,
    } else {
    }
    return
  }
  func.func @transform_0(%arg0: i32, %arg1: i32) -> (i32, i32) {
    %c0_i32 = arith.constant 0 : i32
    return %arg0, %arg1 : i32, i32
  }
  func.func @transform_1(%arg0: i32, %arg1: i32) -> (i32, i32) {
    %c0_i32 = arith.constant 0 : i32
    %c0_i32_0 = arith.constant 0 : i32
    return %arg1, %c0_i32 : i32, i32
  }
  func.func @transform_2(%arg0: i32, %arg1: i32) -> (i32, i32) {
    %c0_i32 = arith.constant 0 : i32
    %c0_i32_0 = arith.constant 0 : i32
    return %arg0, %c0_i32 : i32, i32
  }
  func.func @transform_3(%arg0: i32, %arg1: i32) -> (i32, i32) {
    %c0_i32 = arith.constant 0 : i32
    %c0_i32_0 = arith.constant 0 : i32
    return %arg0, %c0_i32 : i32, i32
  }
  func.func @transform_4(%arg0: i32, %arg1: i32) -> (i32, i32) {
    %c0_i32 = arith.constant 0 : i32
    %c0_i32_0 = arith.constant 0 : i32
    %c0_i32_1 = arith.constant 0 : i32
    return %c0_i32, %c0_i32_0 : i32, i32
  }
  func.func @transform_5(%arg0: i32, %arg1: i32) -> (i32, i32) {
    %c0_i32 = arith.constant 0 : i32
    %c0_i32_0 = arith.constant 0 : i32
    %c0_i32_1 = arith.constant 0 : i32
    return %c0_i32, %c0_i32_0 : i32, i32
  }
  func.func @transform_6(%arg0: i32, %arg1: i32) -> (i32, i32) {
    %c0_i32 = arith.constant 0 : i32
    %c0_i32_0 = arith.constant 0 : i32
    %c0_i32_1 = arith.constant 0 : i32
    return %c0_i32, %c0_i32_0 : i32, i32
  }
  func.func @transform_7(%arg0: i32, %arg1: i32) -> (i32, i32) {
    %c0_i32 = arith.constant 0 : i32
    %c0_i32_0 = arith.constant 0 : i32
    %c0_i32_1 = arith.constant 0 : i32
    return %c0_i32, %c0_i32_0 : i32, i32
  }
  func.func @transform_8(%arg0: i32, %arg1: i32) -> (i32, i32) {
    %c0_i32 = arith.constant 0 : i32
    %c0_i32_0 = arith.constant 0 : i32
    return %arg0, %c0_i32 : i32, i32
  }
}

</mosaic_0001>

<bundles_post_ra>
// kernel: tpu_custom_call.1
= control target key start
LH: loop header
LB: loop body
LE: loop exit
PB: predicated region body
PF: predicated region fallthrough
CT: control target
= control target key end

     0   :  { %13 = vsyncpa [#allocation4], 0  ;;  %s660_s0 = inlined_call_operand.hbm [shape: bf16[32,128], index: 0, kind: input, shape index: {}]   ;;  %s661_s1 = inlined_call_operand.hbm [shape: f32[128,128], index: 1, kind: input, shape index: {}]   ;;  %s662_s2 = inlined_call_operand.vmem [shape: f32[32,128], index: 2, kind: input, shape index: {}]   ;;  %s663_s3 = inlined_call_operand.vmem [shape: f32[32,1], index: 3, kind: input, shape index: {}]   ;;  %s664_s4 = inlined_call_operand.hbm [shape: f32[256,128], index: 4, kind: input, shape index: {}]   ;;  %s665_s5 = inlined_call_operand.vmem [shape: f32[1,128], index: 5, kind: input, shape index: {}]   ;;  %s666_s6 = inlined_call_operand.hbm [shape: f32[128,128], index: 6, kind: input, shape index: {}]   ;;  %s667_s7 = inlined_call_operand.vmem [shape: f32[1,128], index: 7, kind: input, shape index: {}]   ;;  %s668_s8 = inlined_call_operand.hbm [shape: f32[32,128], index: 8, kind: output, shape index: {}]  }
   0x1   :  { %14 = vsyncpa [#allocation7], 0 }
   0x2   :  { %15 = vsyncpa [#allocation10], 0  ;;  %s34_s29 = sshll.u32 %s661_s1, 4  ;;  %s35_s29 = int_to_ptr.hbm [resolvable:$true] %s34_s29 }
   0x3   :  { %16 = vsyncpa [#allocation5], 0  ;;  %s548_s30 = smov [#allocation6]   ;;  %s21_s12 = sshll.u32 %s660_s0, 4  ;;  %s22_s12 = int_to_ptr.hbm [resolvable:$true] %s21_s12 }
   0x4   :  { %s36_s9 = sshll.u32 %s548_s30, 4  ;;  %s549_s13 = smov 128   ;;  %s37_s9 = int_to_ptr.vmem [resolvable:$true] %s36_s9 }
   0x5   :  { %s550_s14 = smov 8   ;;  %s551_s15 = smov [#allocation3]  }
   0x6   :  { %42 = dma.hbm_to_vmem [thread:$0]  %s35_s29, 2048, %s37_s9, [#allocation7], %s549_s13, %s549_s13, %s550_s14  }
   0x7   :  { %s23_s16 = sshll.u32 %s551_s15, 4  ;;  %s552_s1 = smov 64   ;;  %s24_s16 = int_to_ptr.vmem [resolvable:$true] %s23_s16 }
   0x8   :  { %s553_s17 = smov 4   ;;  %s51_s20 = sshll.u32 %s664_s4, 4  ;;  %s52_s20 = int_to_ptr.hbm [resolvable:$true] %s51_s20 }
   0x9   :  { %29 = dma.hbm_to_vmem [thread:$0]  %s22_s12, 256, %s24_s16, [#allocation4], %s552_s1, %s552_s1, %s553_s17  }
   0xa   :  { %s554_s21 = smov [#allocation8]   ;;  %s66_s24 = sshll.u32 %s666_s6, 4  ;;  %s67_s24 = int_to_ptr.hbm [resolvable:$true] %s66_s24 }
   0xb   :  { %s53_s0 = sshll.u32 %s554_s21, 4  ;;  %s555_s25 = smov [#allocation9]   ;;  %s54_s0 = int_to_ptr.vmem [resolvable:$true] %s53_s0 }
   0xc   :  { %59 = dma.hbm_to_vmem [thread:$0]  %s52_s20, 4096, %s54_s0, [#allocation7], %s549_s13, %s549_s13, %s550_s14  }
   0xd   :  { %s68_s26 = sshll.u32 %s555_s25, 4  ;;  %s69_s26 = int_to_ptr.vmem [resolvable:$true] %s68_s26 }
   0xe   :  { %74 = dma.hbm_to_vmem [thread:$0]  %s67_s24, 2048, %s69_s26, [#allocation10], %s549_s13, %s549_s13, %s550_s14  }
   0xf   :  { %540 = dma.done.wait [#allocation4], 256  }
  0x10   :  { %541 = vsyncadd [#allocation4], 4294967040 }
  0x11   :  { %542 = dma.done.wait [#allocation7], 6144  }
  0x12   :  { %543 = vsyncadd [#allocation7], 4294961152 }
  0x13   :  { %544 = dma.done.wait [#allocation10], 2048  }
  0x14   :  { %545 = vsyncadd [#allocation10], 4294965248  ;;  %v132_v0 = vld [vmem:[#allocation6 + $0x78] sm:$0xff]  ;;  %v131_v1 = vld [vmem:[#allocation6 + $0x70] sm:$0xff]  ;;  %v556_v2 = vmov 0   ;;  %s557_s21 = smov [#allocation11]  }
  0x15   :  { %133 = vmatpush.msra.mxu0 %v132_v0  ;;  %416 = vset.pattern.permute.xlu0 %v556_v2  ;;  %v130_v3 = vld [vmem:[#allocation6 + $0x68] sm:$0xff]  ;;  %v129_v4 = vld [vmem:[#allocation6 + $0x60] sm:$0xff]  ;;  %v177_v5 = vld [vmem:[%s663_s3] sm:$0xff]  ;;  %s380_s0 = sshll.u32 %s557_s21, 4  ;;  %s382_s24 = sshll.u32 %s668_s8, 4  ;;  %s381_s0 = int_to_ptr.vmem [resolvable:$true] %s380_s0  ;;  %s383_s24 = int_to_ptr.hbm [resolvable:$true] %s382_s24 }
  0x16   :  { %417 = vset.pattern.permute.xlu1 %v556_v2  ;;  %v128_v6 = vld [vmem:[#allocation6 + $0x58] sm:$0xff]  ;;  %183 = vperm.xlu0 %416, %v177_v5   ;;  %v127_v7 = vld [vmem:[#allocation6 + $0x50] sm:$0xff]  ;;  %v126_v8 = vld [vmem:[#allocation6 + $0x48] sm:$0xff] }
  0x17   :  { %134 = vmatpush.msra.mxu0 %v131_v1  ;;  %v178_v9 = vld [vmem:[%s663_s3 + $0x8] sm:$0xff]  ;;  %v125_v10 = vld [vmem:[#allocation6 + $0x40] sm:$0xff]  ;;  %v123_v12 = vld [vmem:[#allocation6 + $0x30] sm:$0xff] }
  0x18   :  { %v124_v11 = vld [vmem:[#allocation6 + $0x38] sm:$0xff]  ;;  %v179_v13 = vld [vmem:[%s663_s3 + $0x10] sm:$0xff]  ;;  %v122_v14 = vld [vmem:[#allocation6 + $0x28] sm:$0xff] }
  0x19   :  { %135 = vmatpush.msra.mxu0 %v130_v3  ;;  %193 = vperm.xlu1 %417, %v179_v13   ;;  %v121_v15 = vld [vmem:[#allocation6 + $0x20] sm:$0xff]  ;;  %v120_v16 = vld [vmem:[#allocation6 + $0x18] sm:$0xff]  ;;  %v119_v17 = vld [vmem:[#allocation6 + $0x10] sm:$0xff] }
  0x1a   :  { %v398_v18 = vld [vmem:[#allocation3] sm:$0xff]   ;;  %v180_v19 = vld [vmem:[%s663_s3 + $0x18] sm:$0xff]  ;;  %v256_v20 = vld [vmem:[#allocation8 + $0xf8] sm:$0xff] }
  0x1b   :  { %136 = vmatpush.msra.mxu0 %v129_v4  ;;  %v255_v21 = vld [vmem:[#allocation8 + $0xf0] sm:$0xff]  ;;  %v240_v22 = vld [vmem:[#allocation8 + $0x78] sm:$0xff]  ;;  %v118_v24 = vld [vmem:[#allocation6 + $0x8] sm:$0xff]  ;;  %290 = vmatpush.msra.mxu2 %v256_v20  ;;  %v399_v28 = vunpack.c.l.bf16 %v398_v18  ;;  %v400_v36 = vunpack.c.h.bf16 %v398_v18 }
  0x1c   :  { %v239_v23 = vld [vmem:[#allocation8 + $0x70] sm:$0xff]  ;;  %261 = vmatpush.msra.mxu1 %v240_v22  ;;  %v254_v25 = vld [vmem:[#allocation8 + $0xe8] sm:$0xff]  ;;  %v117_v27 = vld [vmem:[#allocation6] sm:$0xff] }
  0x1d   :  { %137 = vmatpush.msra.mxu0 %v128_v6  ;;  %v238_v26 = vld [vmem:[#allocation8 + $0x68] sm:$0xff]  ;;  %291 = vmatpush.msra.mxu2 %v255_v21  ;;  %v253_v29 = vld [vmem:[#allocation8 + $0xe0] sm:$0xff]  ;;  %v252_v31 = vld [vmem:[#allocation8 + $0xd8] sm:$0xff] }
  0x1e   :  { %188 = vperm.xlu0 %416, %v178_v9   ;;  %262 = vmatpush.msra.mxu1 %v239_v23  ;;  %v237_v30 = vld [vmem:[#allocation8 + $0x60] sm:$0xff]  ;;  %v236_v32 = vld [vmem:[#allocation8 + $0x58] sm:$0xff]  ;;  %v251_v33 = vld [vmem:[#allocation8 + $0xd0] sm:$0xff] }
  0x1f   :  { %138 = vmatpush.msra.mxu0 %v127_v7  ;;  %292 = vmatpush.msra.mxu2 %v254_v25  ;;  %v235_v34 = vld [vmem:[#allocation8 + $0x50] sm:$0xff]  ;;  %v250_v35 = vld [vmem:[#allocation8 + $0xc8] sm:$0xff]  ;;  %v249_v38 = vld [vmem:[#allocation8 + $0xc0] sm:$0xff] }
  0x20   :  { %263 = vmatpush.msra.mxu1 %v238_v26  ;;  %v234_v37 = vld [vmem:[#allocation8 + $0x48] sm:$0xff]  ;;  %v233_v39 = vld [vmem:[#allocation8 + $0x40] sm:$0xff]  ;;  %v248_v40 = vld [vmem:[#allocation8 + $0xb8] sm:$0xff] }
  0x21   :  { %139 = vmatpush.msra.mxu0 %v126_v8  ;;  %198 = vperm.xlu1 %417, %v180_v19   ;;  %v232_v41 = vld [vmem:[#allocation8 + $0x38] sm:$0xff]  ;;  %v247_v43 = vld [vmem:[#allocation8 + $0xb0] sm:$0xff]  ;;  %v246_v44 = vld [vmem:[#allocation8 + $0xa8] sm:$0xff] }
  0x22   :  { %293 = vmatpush.msra.mxu2 %v253_v29  ;;  %264 = vmatpush.msra.mxu1 %v237_v30  ;;  %v405_v42 = vld [vmem:[#allocation3 + $0x8] sm:$0xff]   ;;  %v231_v47 = vld [vmem:[#allocation8 + $0x30] sm:$0xff]  ;;  %v245_v48 = vld [vmem:[#allocation8 + $0xa0] sm:$0xff] }
  0x23   :  { %140 = vmatpush.msra.mxu0 %v125_v10  ;;  %v403_v45 = vunpack.c.l.bf16 %v405_v42  ;;  %v404_v46 = vunpack.c.h.bf16 %v405_v42  ;;  %v230_v49 = vld [vmem:[#allocation8 + $0x28] sm:$0xff]  ;;  %v244_v50 = vld [vmem:[#allocation8 + $0x98] sm:$0xff]  ;;  %v229_v51 = vld [vmem:[#allocation8 + $0x20] sm:$0xff] }
  0x24   :  { %294 = vmatpush.msra.mxu2 %v252_v31  ;;  %265 = vmatpush.msra.mxu1 %v236_v32  ;;  %v243_v52 = vld [vmem:[#allocation8 + $0x90] sm:$0xff]  ;;  %v228_v53 = vld [vmem:[#allocation8 + $0x18] sm:$0xff]  ;;  %v242_v54 = vld [vmem:[#allocation8 + $0x88] sm:$0xff] }
  0x25   :  { %141 = vmatpush.msra.mxu0 %v124_v11  ;;  %v227_v55 = vld [vmem:[#allocation8 + $0x10] sm:$0xff]  ;;  %v241_v56 = vld [vmem:[#allocation8 + $0x80] sm:$0xff]  ;;  %v226_v57 = vld [vmem:[#allocation8 + $0x8] sm:$0xff] }
  0x26   :  { %295 = vmatpush.msra.mxu2 %v251_v33  ;;  %266 = vmatpush.msra.mxu1 %v235_v34  ;;  %v225_v58 = vld [vmem:[#allocation8] sm:$0xff]  ;;  %v209_v59 = vld [vmem:[%s662_s2] sm:$0xff]  ;;  %v210_v60 = vld [vmem:[%s662_s2 + $0x8] sm:$0xff] }
  0x27   :  { %142 = vmatpush.msra.mxu0 %v123_v12  ;;  %v211_v61 = vld [vmem:[%s662_s2 + $0x10] sm:$0xff]  ;;  %v338_v62 = vld [vmem:[#allocation9 + $0x78] sm:$0xff]  ;;  %v337_v63 = vld [vmem:[#allocation9 + $0x70] sm:$0xff] }
  0x28   :  { %296 = vmatpush.msra.mxu2 %v250_v35  ;;  %267 = vmatpush.msra.mxu1 %v234_v37  ;;  %v212_v0 = vld [vmem:[%s662_s2 + $0x18] sm:$0xff]  ;;  %v335_v3 = vld [vmem:[#allocation9 + $0x60] sm:$0xff]  ;;  %v334_v6 = vld [vmem:[#allocation9 + $0x58] sm:$0xff] }
  0x29   :  { %143 = vmatpush.msra.mxu0 %v122_v14  ;;  %343 = vmatpush.msra.mxu3 %v338_v62  ;;  %v336_v1 = vld [vmem:[#allocation9 + $0x68] sm:$0xff]  ;;  %v333_v7 = vld [vmem:[#allocation9 + $0x50] sm:$0xff]  ;;  %v331_v9 = vld [vmem:[#allocation9 + $0x40] sm:$0xff] }
  0x2a   :  { %297 = vmatpush.msra.mxu2 %v249_v38  ;;  %268 = vmatpush.msra.mxu1 %v233_v39  ;;  %v332_v8 = vld [vmem:[#allocation9 + $0x48] sm:$0xff]  ;;  %v330_v13 = vld [vmem:[#allocation9 + $0x38] sm:$0xff]  ;;  %v329_v14 = vld [vmem:[#allocation9 + $0x30] sm:$0xff] }
  0x2b   :  { %144 = vmatpush.msra.mxu0 %v121_v15  ;;  %344 = vmatpush.msra.mxu3 %v337_v63  ;;  %v328_v15 = vld [vmem:[#allocation9 + $0x28] sm:$0xff]  ;;  %v326_v23 = vld [vmem:[#allocation9 + $0x18] sm:$0xff]  ;;  %v323_v26 = vld [vmem:[#allocation9] sm:$0xff] }
  0x2c   :  { %298 = vmatpush.msra.mxu2 %v248_v40  ;;  %269 = vmatpush.msra.mxu1 %v232_v41  ;;  %v324_v25 = vld [vmem:[#allocation9 + $0x8] sm:$0xff] }
  0x2d   :  { %145 = vmatpush.msra.mxu0 %v120_v16  ;;  %345 = vmatpush.msra.mxu3 %v336_v1 }
  0x2e   :  { %299 = vmatpush.msra.mxu2 %v247_v43  ;;  %270 = vmatpush.msra.mxu1 %v231_v47 }
  0x2f   :  { %146 = vmatpush.msra.mxu0 %v119_v17  ;;  %346 = vmatpush.msra.mxu3 %v335_v3  ;;  %v327_v17 = vld [vmem:[#allocation9 + $0x20] sm:$0xff] }
  0x30   :  { %300 = vmatpush.msra.mxu2 %v246_v44  ;;  %271 = vmatpush.msra.mxu1 %v230_v49 }
  0x31   :  { %147 = vmatpush.msra.mxu0 %v118_v24  ;;  %347 = vmatpush.msra.mxu3 %v334_v6  ;;  %v325_v24 = vld [vmem:[#allocation9 + $0x10] sm:$0xff] }
  0x32   :  { %301 = vmatpush.msra.mxu2 %v245_v48  ;;  %272 = vmatpush.msra.mxu1 %v229_v51  ;;  %v419_v48 = vld [vmem:[%s667_s7] ss:$0 sm:$0xff] }
  0x33   :  { %148 = vmatpush.msra.mxu0 %v117_v27  ;;  %348 = vmatpush.msra.mxu3 %v333_v7 }
  0x34   :  { %149 = vmatmul.f32.vlgmr.msra.gmra.mxu0 %v399_v28  ;;  %302 = vmatpush.msra.mxu2 %v244_v50  ;;  %v418_v28 = vld [vmem:[%s665_s5] ss:$0 sm:$0xff] }
  0x35   :  { %273 = vmatpush.msra.mxu1 %v228_v53  ;;  %349 = vmatpush.msra.mxu3 %v332_v8 }
  0x36   :  { %303 = vmatpush.msra.mxu2 %v243_v52 }
  0x37   :  { %274 = vmatpush.msra.mxu1 %v227_v55  ;;  %350 = vmatpush.msra.mxu3 %v331_v9 }
  0x38   :  { %304 = vmatpush.msra.mxu2 %v242_v54 }
  0x39   :  { %275 = vmatpush.msra.mxu1 %v226_v57  ;;  %351 = vmatpush.msra.mxu3 %v330_v13 }
  0x3a   :  { %305 = vmatpush.msra.mxu2 %v241_v56 }
  0x3b   :  { %276 = vmatpush.msra.mxu1 %v225_v58  ;;  %352 = vmatpush.msra.mxu3 %v329_v14 }
  0x3c   :  { %152 = vmatmul.f32.gmra.mxu0 %v400_v36  ;;  %277 = vmatmul.f32.vlgmr.msra.gmra.mxu1 %v209_v59 }
  0x3d   :  { %353 = vmatpush.msra.mxu3 %v328_v15 }
  0x3f   :  { %354 = vmatpush.msra.mxu3 %v327_v17 }
  0x41   :  { %355 = vmatpush.msra.mxu3 %v326_v23 }
  0x43   :  { %356 = vmatpush.msra.mxu3 %v325_v24 }
  0x44   :  { %155 = vmatmul.f32.gmra.mxu0 %v403_v45  ;;  %280 = vmatmul.f32.gmra.mxu1 %v210_v60 }
  0x45   :  { %357 = vmatpush.msra.mxu3 %v324_v25 }
  0x47   :  { %358 = vmatpush.msra.mxu3 %v323_v26 }
  0x4c   :  { %158 = vmatmul.f32.gmra.mxu0 %v404_v46  ;;  %283 = vmatmul.f32.gmra.mxu1 %v211_v61 }
  0x54   :  { %286 = vmatmul.f32.gmra.mxu1 %v212_v0 }
  0x88   :  { %v184_v2 = vpop.permute.xlu0 %183 }
  0x8b   :  { %v194_v16 = vpop.permute.xlu1 %193 }
  0x90   :  { %v189_v10 = vpop.permute.xlu0 %188 }
  0x93   :  { %v199_v20 = vpop.permute.xlu1 %198 }
  0xb1   :  { %v150_v4 = vpop.f32.mrf.mxu0 }
  0xb2   :  { %v201_v5 = vmul.f32 %v184_v2, %v150_v4 }
  0xb4   :  { %306 = vmatmul.f32.vlgmr.msra.gmra.mxu2 %v201_v5 }
  0xb9   :  { %v153_v11 = vpop.f32.mrf.mxu0  ;;  %v278_v27 = vpop.f32.mrf.mxu1 }
  0xba   :  { %v202_v12 = vmul.f32 %v189_v10, %v153_v11  ;;  %v279_v29 = vadd.f32 %v418_v28, %v278_v27 }
  0xbc   :  { %309 = vmatmul.f32.gmra.mxu2 %v202_v12 }
  0xc1   :  { %v156_v18 = vpop.f32.mrf.mxu0  ;;  %v281_v30 = vpop.f32.mrf.mxu1 }
  0xc2   :  { %v203_v19 = vmul.f32 %v194_v16, %v156_v18  ;;  %v282_v34 = vadd.f32 %v418_v28, %v281_v30 }
  0xc4   :  { %312 = vmatmul.f32.gmra.mxu2 %v203_v19 }
  0xc9   :  { %v159_v21 = vpop.f32.mrf.mxu0  ;;  %v284_v36 = vpop.f32.mrf.mxu1 }
  0xca   :  { %v204_v22 = vmul.f32 %v199_v20, %v159_v21  ;;  %v285_v39 = vadd.f32 %v418_v28, %v284_v36 }
  0xcc   :  { %315 = vmatmul.f32.gmra.mxu2 %v204_v22 }
  0xd1   :  { %v287_v42 = vpop.f32.mrf.mxu1 }
  0xd2   :  { %v288_v44 = vadd.f32 %v418_v28, %v287_v42 }
 0x137   :  { %v307_v31 = vpop.f32.mrf.mxu2 }
 0x138   :  { %v308_v32 = vadd.f32 %v307_v31, %v279_v29 }
 0x13a   :  { %v319_v33 = vmax.f32 %v308_v32, 0.0 }
 0x13c   :  { %359 = vmatmul.f32.vlgmr.msra.gmra.mxu3 %v319_v33 }
 0x13f   :  { %v310_v35 = vpop.f32.mrf.mxu2 }
 0x140   :  { %v311_v37 = vadd.f32 %v310_v35, %v282_v34 }
 0x142   :  { %v320_v38 = vmax.f32 %v311_v37, 0.0 }
 0x144   :  { %362 = vmatmul.f32.gmra.mxu3 %v320_v38 }
 0x147   :  { %v313_v40 = vpop.f32.mrf.mxu2 }
 0x148   :  { %v314_v41 = vadd.f32 %v313_v40, %v285_v39 }
 0x14a   :  { %v321_v43 = vmax.f32 %v314_v41, 0.0 }
 0x14c   :  { %365 = vmatmul.f32.gmra.mxu3 %v321_v43 }
 0x14f   :  { %v316_v45 = vpop.f32.mrf.mxu2 }
 0x150   :  { %v317_v46 = vadd.f32 %v316_v45, %v288_v44 }
 0x152   :  { %v322_v47 = vmax.f32 %v317_v46, 0.0 }
 0x154   :  { %368 = vmatmul.f32.gmra.mxu3 %v322_v47 }
 0x1bf   :  { %v360_v49 = vpop.f32.mrf.mxu3 }
 0x1c0   :  { %v361_v50 = vadd.f32 %v419_v48, %v360_v49 }
 0x1c2   :  { %372 = vst [vmem:[#allocation11] sm:$0xff] %v361_v50 }
 0x1c7   :  { %v363_v51 = vpop.f32.mrf.mxu3 }
 0x1c8   :  { %v364_v52 = vadd.f32 %v419_v48, %v363_v51 }
 0x1ca   :  { %373 = vst [vmem:[#allocation11 + $0x8] sm:$0xff] %v364_v52 }
 0x1cf   :  { %v366_v53 = vpop.f32.mrf.mxu3 }
 0x1d0   :  { %v367_v54 = vadd.f32 %v419_v48, %v366_v53 }
 0x1d2   :  { %374 = vst [vmem:[#allocation11 + $0x10] sm:$0xff] %v367_v54 }
 0x1d7   :  { %v369_v55 = vpop.f32.mrf.mxu3 }
 0x1d8   :  { %v370_v56 = vadd.f32 %v419_v48, %v369_v55 }
 0x1da   :  { %375 = vst [vmem:[#allocation11 + $0x18] sm:$0xff] %v370_v56 }
 0x1db   :  { %388 = dma.vmem_to_hbm [thread:$0]  %s381_s0, 512, %s383_s24, [#allocation5], %s549_s13, %s549_s13, %s550_s14  }
 0x1dc   :  { %546 = dma.done.wait [#allocation5], 512  }
 0x1dd   :  { %547 = vsyncadd [#allocation5], 4294966784 }
 0x1de   :  { %393 = vsyncpa [#allocation4], 1 }
 0x1df   :  { %394 = vsyncpa [#allocation7], 1 }
 0x1e0   :  { %395 = vsyncpa [#allocation10], 1 }
 0x1e1   :  { %396 = vsyncpa [#allocation5], 1 }

</bundles_post_ra>
